<compile_context>
chip_gen: v7x
topology: tpu7x:2x2x1
jax: 0.10.0
libtpu: 0.0.40
codegen_flags: <defaults>
</compile_context>

<pallas_src>
import functools

import jax
import jax.numpy as jnp
from jax.experimental import pallas as pl
from jax.experimental.pallas import tpu as pltpu


# ---------------------------------------------------------------------------
# Kernel
# ---------------------------------------------------------------------------
def ca_kernel(x_ref, w1t_ref, w2_ref, o_ref, *, inv_hw):
    """One grid step processes a (B_blk, C, H*W) slab of the batch.

    x_ref / o_ref : (B_blk, C, HW)   activations (HW on lanes, C on sublanes)
    w1t_ref       : (C, C_red)       first 1x1-conv weight, pre-transposed
    w2_ref        : (C, C_red)       second 1x1-conv weight (PyTorch layout)
    """
    # --- Global average + max pooling over the spatial (lane) axis. ---------
    # keepdims=True keeps the channel vector on the sublane axis for the whole
    # kernel, so no lane<->sublane relayout is ever required.  x_ref is read
    # separately per consumer so the full block is never held live in vregs.
    avg = jnp.sum(x_ref[...].astype(jnp.float32), axis=-1, keepdims=True) * inv_hw
    mx = jnp.max(x_ref[...].astype(jnp.float32), axis=-1, keepdims=True)
    s = avg + mx                                               # (B, C, 1)

    w1t = w1t_ref[...].astype(jnp.float32)                     # (C, C_red)
    w2 = w2_ref[...].astype(jnp.float32)                       # (C, C_red)

    # --- 1x1 conv (C -> C_red), bias=False, + ReLU. --------------------------
    # Tiny contraction over C (sublane axis): VPU multiply + sublane reduce,
    # no MXU push for a depth-4 matmul.
    z = jnp.sum(s * w1t[None, :, :], axis=1, keepdims=True)    # (B, 1, C_red)
    z = jnp.maximum(z, 0.0)

    # --- 1x1 conv (C_red -> C), bias=False, + sigmoid. -----------------------
    t = jnp.sum(z * w2[None, :, :], axis=2, keepdims=True)     # (B, C, 1)
    # sigmoid(t) = 1 / (1 + exp(-t)); exp(-t) overflowing to inf for very
    # negative t still yields the correct limit (reciprocal(inf) = 0, no NaN).
    y = pl.reciprocal(1.0 + jnp.exp(-t), approx=False)         # (B, C, 1)

    # --- Channel-wise rescale; lane-dense multiply + store. ------------------
    # y broadcasts along the lane axis only (C already on sublanes).
    o_ref[...] = (x_ref[...].astype(jnp.float32) * y).astype(o_ref.dtype)


# ---------------------------------------------------------------------------
# Wrapper
# ---------------------------------------------------------------------------
def ca_layer_forward(x_nchw, w1, w2, *, target_block_bytes=1 << 20):
    """CALayer forward.

    x_nchw: (N, C, H, W)
    w1:     (C//reduction, C)  -- PyTorch Conv2d weight with 1x1 dims squeezed
    w2:     (C, C//reduction)  -- PyTorch Conv2d weight with 1x1 dims squeezed
    """
    N, C, H, W = x_nchw.shape
    hw = H * W
    x3 = x_nchw.reshape(N, C, hw)           # contiguous view, no data movement
    # Present the first conv weight with the contraction axis (C) on sublanes
    # so the in-kernel contraction lines up with s's layout.  Done once here.
    w1t = jnp.transpose(w1)                  # (C, C_red)

    # Batch-blocked tiling: ~1 MiB input blocks, but keep >= 2 grid steps when
    # N >= 2 so the "parallel" grid axis can still use both v7x TensorCores.
    bytes_per_batch = C * hw * x3.dtype.itemsize
    b_blk = max(1, int(target_block_bytes) // int(bytes_per_batch))
    if N >= 2:
        b_blk = min(b_blk, pl.cdiv(N, 2))
    b_blk = min(b_blk, N)
    grid = (pl.cdiv(N, b_blk),)
    # Note: a partial last block is safe — every output row depends only on
    # its own batch row, and out-of-bounds rows are masked on store.

    out3 = pl.pallas_call(
        functools.partial(ca_kernel, inv_hw=1.0 / hw),
        out_shape=jax.ShapeDtypeStruct((N, C, hw), x_nchw.dtype),
        grid=grid,
        in_specs=[
            pl.BlockSpec((b_blk, C, hw), lambda n: (n, 0, 0)),
            pl.BlockSpec(w1t.shape, lambda n: (0, 0)),   # resident across grid
            pl.BlockSpec(w2.shape, lambda n: (0, 0)),    # resident across grid
        ],
        out_specs=pl.BlockSpec((b_blk, C, hw), lambda n: (n, 0, 0)),
        compiler_params=pltpu.CompilerParams(
            dimension_semantics=("parallel",)),          # megacore split
    )(x3, w1t, w2)

    return out3.reshape(N, C, H, W)


# ---------------------------------------------------------------------------
# Pure-JAX reference (for correctness check)
# ---------------------------------------------------------------------------
def ca_reference(x, w1, w2):
    y1 = jnp.mean(x, axis=(2, 3))                       # AdaptiveAvgPool2d(1)
    y2 = jnp.max(x, axis=(2, 3))                        # AdaptiveMaxPool2d(1)
    s = y1 + y2
    z = jnp.maximum(jnp.einsum("nc,rc->nr", s, w1), 0.0)
    y = jax.nn.sigmoid(jnp.einsum("nr,cr->nc", z, w2))
    return x * y[:, :, None, None]


# ---------------------------------------------------------------------------
if __name__ == "__main__":
    # CALayer(channel=64, reduction=16, bias=False)
    N, C, H, W = 2, 64, 16, 16
    reduction = 16
    C_red = C // reduction                 # = 4 (reduction must divide channel)

    key = jax.random.PRNGKey(0)
    kx, k1, k2 = jax.random.split(key, 3)
    x = jax.random.normal(kx, (N, C, H, W), dtype=jnp.float32)
    # 1x1 conv weights in PyTorch's (C_out, C_in) layout (kernel dims squeezed).
    w1 = jax.random.normal(k1, (C_red, C), dtype=jnp.float32) * (1.0 / C ** 0.5)
    w2 = jax.random.normal(k2, (C, C_red), dtype=jnp.float32) * (1.0 / C_red ** 0.5)

    out = jax.jit(ca_layer_forward)(x, w1, w2)
    out = jax.block_until_ready(out)

    ref = ca_reference(x, w1, w2)
    assert out.shape == (N, C, H, W)
    assert jnp.allclose(out, ref, atol=1e-4, rtol=1e-4), "mismatch vs reference"

    print("KERNEL_OK")
</pallas_src>

<mosaic_0001>
module attributes {stable_mosaic.version = 11 : i64} {
  func.func @ca_kernel(%arg0: i32, %arg1: memref<1x64x256xf32, #tpu.memory_space<vmem>>, %arg2: memref<64x4xf32, #tpu.memory_space<vmem>>, %arg3: memref<64x4xf32, #tpu.memory_space<vmem>>, %arg4: memref<1x64x256xf32, #tpu.memory_space<vmem>>) attributes {dimension_semantics = [#tpu.dimension_semantics<parallel>], iteration_bounds = array<i64: 2>, scalar_prefetch = 0 : i64, scratch_operands = 0 : i64, tpu.core_type = #tpu.core_type<tc>, window_params = [{transform_indices = @transform_0, window_bounds = array<i64: 1, 64, 256>}, {pipeline_mode = #tpu.pipeline_mode<synchronous>, transform_indices = @transform_1, window_bounds = array<i64: 64, 4>}, {pipeline_mode = #tpu.pipeline_mode<synchronous>, transform_indices = @transform_2, window_bounds = array<i64: 64, 4>}, {transform_indices = @transform_3, window_bounds = array<i64: 1, 64, 256>}]} {
    %c0 = arith.constant 0 : index
    %c0_0 = arith.constant 0 : index
    %c0_1 = arith.constant 0 : index
    %0 = vector.load %arg1[%c0, %c0_0, %c0_1] : memref<1x64x256xf32, #tpu.memory_space<vmem>>, vector<1x64x256xf32>
    %cst = arith.constant dense<0.000000e+00> : vector<1x64xf32>
    %1 = vector.multi_reduction <add>, %0, %cst [2] : vector<1x64x256xf32> to vector<1x64xf32>
    %2 = vector.shape_cast %1 : vector<1x64xf32> to vector<1x64x1xf32>
    %cst_2 = arith.constant 3.906250e-03 : f32
    %3 = vector.broadcast %cst_2 : f32 to vector<1x64x1xf32>
    %4 = arith.mulf %2, %3 : vector<1x64x1xf32>
    %c0_3 = arith.constant 0 : index
    %c0_4 = arith.constant 0 : index
    %c0_5 = arith.constant 0 : index
    %5 = vector.load %arg1[%c0_3, %c0_4, %c0_5] : memref<1x64x256xf32, #tpu.memory_space<vmem>>, vector<1x64x256xf32>
    %cst_6 = arith.constant dense<0xFF800000> : vector<1x64xf32>
    %6 = vector.multi_reduction <maximumf>, %5, %cst_6 [2] : vector<1x64x256xf32> to vector<1x64xf32>
    %7 = vector.shape_cast %6 : vector<1x64xf32> to vector<1x64x1xf32>
    %8 = arith.addf %4, %7 : vector<1x64x1xf32>
    %c0_7 = arith.constant 0 : index
    %c0_8 = arith.constant 0 : index
    %9 = vector.load %arg2[%c0_7, %c0_8] : memref<64x4xf32, #tpu.memory_space<vmem>>, vector<64x4xf32>
    %c0_9 = arith.constant 0 : index
    %c0_10 = arith.constant 0 : index
    %10 = vector.load %arg3[%c0_9, %c0_10] : memref<64x4xf32, #tpu.memory_space<vmem>>, vector<64x4xf32>
    %11 = vector.shape_cast %9 : vector<64x4xf32> to vector<1x64x4xf32>
    %12 = vector.broadcast %8 : vector<1x64x1xf32> to vector<1x64x4xf32>
    %13 = arith.mulf %12, %11 : vector<1x64x4xf32>
    %cst_11 = arith.constant dense<0.000000e+00> : vector<1x4xf32>
    %14 = vector.multi_reduction <add>, %13, %cst_11 [1] : vector<1x64x4xf32> to vector<1x4xf32>
    %15 = vector.shape_cast %14 : vector<1x4xf32> to vector<1x1x4xf32>
    %cst_12 = arith.constant 0.000000e+00 : f32
    %16 = vector.broadcast %cst_12 : f32 to vector<1x1x4xf32>
    %17 = arith.maximumf %15, %16 : vector<1x1x4xf32>
    %18 = vector.shape_cast %10 : vector<64x4xf32> to vector<1x64x4xf32>
    %19 = vector.broadcast %17 : vector<1x1x4xf32> to vector<1x64x4xf32>
    %20 = arith.mulf %19, %18 : vector<1x64x4xf32>
    %cst_13 = arith.constant dense<0.000000e+00> : vector<1x64xf32>
    %21 = vector.multi_reduction <add>, %20, %cst_13 [2] : vector<1x64x4xf32> to vector<1x64xf32>
    %22 = vector.shape_cast %21 : vector<1x64xf32> to vector<1x64x1xf32>
    %cst_14 = arith.constant 0.000000e+00 : f32
    %23 = vector.broadcast %cst_14 : f32 to vector<1x64x1xf32>
    %24 = arith.subf %23, %22 : vector<1x64x1xf32>
    %25 = math.exp %24 : vector<1x64x1xf32>
    %cst_15 = arith.constant 1.000000e+00 : f32
    %26 = vector.broadcast %cst_15 : f32 to vector<1x64x1xf32>
    %27 = arith.addf %26, %25 : vector<1x64x1xf32>
    %28 = tpu.reciprocal %27 : vector<1x64x1xf32> -> vector<1x64x1xf32>
    %c0_16 = arith.constant 0 : index
    %c0_17 = arith.constant 0 : index
    %c0_18 = arith.constant 0 : index
    %29 = vector.load %arg1[%c0_16, %c0_17, %c0_18] : memref<1x64x256xf32, #tpu.memory_space<vmem>>, vector<1x64x256xf32>
    %30 = vector.broadcast %28 : vector<1x64x1xf32> to vector<1x64x256xf32>
    %31 = arith.mulf %29, %30 : vector<1x64x256xf32>
    %c0_19 = arith.constant 0 : index
    %c0_20 = arith.constant 0 : index
    %c0_21 = arith.constant 0 : index
    %32 = vector.load %arg4[%c0_19, %c0_20, %c0_21] : memref<1x64x256xf32, #tpu.memory_space<vmem>>, vector<1x64x256xf32>
    tpu.vector_store %arg4[%c0_19, %c0_20, %c0_21], %31 {strides = array<i32>} : memref<1x64x256xf32, #tpu.memory_space<vmem>>, vector<1x64x256xf32>,
    return
  }
  func.func @transform_0(%arg0: i32) -> (i32, i32, i32) {
    %c0_i32 = arith.constant 0 : i32
    %c0_i32_0 = arith.constant 0 : i32
    %c0_i32_1 = arith.constant 0 : i32
    return %arg0, %c0_i32, %c0_i32_0 : i32, i32, i32
  }
  func.func @transform_1(%arg0: i32) -> (i32, i32) {
    %c0_i32 = arith.constant 0 : i32
    %c0_i32_0 = arith.constant 0 : i32
    %c0_i32_1 = arith.constant 0 : i32
    return %c0_i32, %c0_i32_0 : i32, i32
  }
  func.func @transform_2(%arg0: i32) -> (i32, i32) {
    %c0_i32 = arith.constant 0 : i32
    %c0_i32_0 = arith.constant 0 : i32
    %c0_i32_1 = arith.constant 0 : i32
    return %c0_i32, %c0_i32_0 : i32, i32
  }
  func.func @transform_3(%arg0: i32) -> (i32, i32, i32) {
    %c0_i32 = arith.constant 0 : i32
    %c0_i32_0 = arith.constant 0 : i32
    %c0_i32_1 = arith.constant 0 : i32
    return %arg0, %c0_i32, %c0_i32_0 : i32, i32, i32
  }
}

</mosaic_0001>

<bundles_post_ra>
// kernel: ca_layer_forward.1
= control target key start
LH: loop header
LB: loop body
LE: loop exit
PB: predicated region body
PF: predicated region fallthrough
CT: control target
= control target key end

     0   :  { %s538_s12 = smov 0   ;;  %s742_s0 = inlined_call_operand.vmem [shape: f32[2,64,256], index: 0, kind: input, shape index: {}]   ;;  %s743_s1 = inlined_call_operand.vmem [shape: f32[64,4], index: 1, kind: input, shape index: {}]   ;;  %s744_s2 = inlined_call_operand.vmem [shape: f32[64,4], index: 2, kind: input, shape index: {}]   ;;  %s745_s3 = inlined_call_operand.vmem [shape: f32[2,64,256], index: 3, kind: output, shape index: {}]  }
   0x1 LB: > { %s457_s13 = sadd.s32 4294967295, %s516_s12   ;;  %p461_p0 = scmp.ge.s32.totalorder %s516_s12, 1  ;;  %s516_s12 = sphi %s538_s12, %s13_s12  }
   0x2   : > { %p137_p1 = scmp.lt.s32.totalorder %s516_s12, 3 }
   0x4   : > { %p138_p2 = pnand %p461_p0, %p137_p1 }
   0x5   : > { %p161_p3 = scmp.lt.s32.totalorder (!%p138_p2), %s457_s13, 1  ;;  %v252_v44 = vld [vmem:[%s743_s1 + $0x8] sm:$0xff] (!%p138_p2)  ;;  %v251_v49 = vld [vmem:[%s743_s1] sm:$0xff] (!%p138_p2)  ;;  %v253_v50 = vld [vmem:[%s743_s1 + $0x10] sm:$0xff] (!%p138_p2)  ;;  %vm275_vm0 = vcmask (!%p138_p2), 31744  }
   0x6   : > { %141 = sbr.rel (%p138_p2) target bundleno = 404 (0x194), region = 32  ;;  %v254_v54 = vld [vmem:[%s743_s1 + $0x18] sm:$0xff] (!%p138_p2)  ;;  %v255_v59 = vld [vmem:[%s743_s1 + $0x20] sm:$0xff] (!%p138_p2) }
   0xd   : > { %s747_s13 = smov (!%p161_p3, %s457_s13), 1 }
   0xe   : > { %s468_s14 = sshll.u32 %s747_s13, 7 }
   0xf   : > { %s554_s17 = scalar_lea.vmem %s742_s0, %s468_s14  ;;  %s705_s28 = scalar_lea.vmem %s745_s3, %s468_s14 }
  0x10   : > { %v557_v0 = vld [vmem:[%s554_s17 + $0x20] sm:$0xff]  ;;  %v560_v1 = vld [vmem:[%s554_s17 + $0x28] sm:$0xff]  ;;  %v571_v5 = vld [vmem:[%s554_s17 + $0x10] sm:$0xff] }
  0x11   : > { %v563_v2 = vld [vmem:[%s554_s17] sm:$0xff]  ;;  %v193_v3 = vadd.f32 %v560_v1, %v557_v0  ;;  %v568_v4 = vld [vmem:[%s554_s17 + $0x8] sm:$0xff]  ;;  %v574_v6 = vld [vmem:[%s554_s17 + $0x18] sm:$0xff]  ;;  %v225_v17 = vmax.f32 %v557_v0, %v560_v1 }
  0x12   : > { %v187_v7 = vadd.f32 %v568_v4, %v563_v2  ;;  %v219_v8 = vmax.f32 %v563_v2, %v568_v4  ;;  %v190_v9 = vadd.f32 %v574_v6, %v571_v5  ;;  %v583_v10 = vld [vmem:[%s554_s17 + $0x30] sm:$0xff]  ;;  %v586_v11 = vld [vmem:[%s554_s17 + $0x38] sm:$0xff]  ;;  %v222_v13 = vmax.f32 %v571_v5, %v574_v6  ;;  %v593_v14 = vld [vmem:[%s554_s17 + $0x40] sm:$0xff] }
  0x13   : > { %194 = vadd.xlane.f32.xlu1 %v193_v3  ;;  %v196_v12 = vadd.f32 %v586_v11, %v583_v10  ;;  %v596_v15 = vld [vmem:[%s554_s17 + $0x48] sm:$0xff]  ;;  %v603_v18 = vld [vmem:[%s554_s17 + $0x50] sm:$0xff]  ;;  %v606_v19 = vld [vmem:[%s554_s17 + $0x58] sm:$0xff]  ;;  %v228_v21 = vmax.f32 %v583_v10, %v586_v11 }
  0x14   : > { %188 = vadd.xlane.f32.xlu0 %v187_v7  ;;  %v199_v16 = vadd.f32 %v596_v15, %v593_v14  ;;  %v202_v20 = vadd.f32 %v606_v19, %v603_v18  ;;  %v613_v22 = vld [vmem:[%s554_s17 + $0x60] sm:$0xff]  ;;  %v616_v23 = vld [vmem:[%s554_s17 + $0x68] sm:$0xff]  ;;  %v231_v25 = vmax.f32 %v593_v14, %v596_v15  ;;  %v623_v26 = vld [vmem:[%s554_s17 + $0x70] sm:$0xff]  ;;  %v234_v29 = vmax.f32 %v603_v18, %v606_v19 }
  0x15   : > { %v205_v24 = vadd.f32 %v616_v23, %v613_v22  ;;  %v626_v27 = vld [vmem:[%s554_s17 + $0x78] sm:$0xff]  ;;  %v237_v31 = vmax.f32 %v613_v22, %v616_v23 }
  0x16   : > { %v208_v28 = vadd.f32 %v626_v27, %v623_v26  ;;  %v240_v30 = vmax.f32 %v623_v26, %v626_v27 }
  0x17   : > { %220 = vmax.xlane.f32.xlu1 %v219_v8 }
  0x18   : > { %191 = vadd.xlane.f32.xlu0 %v190_v9 }
  0x1b   : > { %197 = vadd.xlane.f32.xlu1 %v196_v12 }
  0x1c   : > { %223 = vmax.xlane.f32.xlu0 %v222_v13 }
  0x1f   : > { %200 = vadd.xlane.f32.xlu1 %v199_v16 }
  0x20   : > { %226 = vmax.xlane.f32.xlu0 %v225_v17  ;;  %v256_v17 = vld [vmem:[%s743_s1 + $0x28] sm:$0xff] }
  0x23   : > { %203 = vadd.xlane.f32.xlu1 %v202_v20 }
  0x24   : > { %229 = vmax.xlane.f32.xlu0 %v228_v21 }
  0x27   : > { %206 = vadd.xlane.f32.xlu1 %v205_v24 }
  0x28   : > { %232 = vmax.xlane.f32.xlu0 %v231_v25 }
  0x2b   : > { %209 = vadd.xlane.f32.xlu1 %v208_v28 }
  0x2c   : > { %235 = vmax.xlane.f32.xlu0 %v234_v29 }
  0x2f   : > { %241 = vmax.xlane.f32.xlu1 %v240_v30 }
  0x30   : > { %238 = vmax.xlane.f32.xlu0 %v237_v31 }
  0xa0   : > { %v195_v32 = vpop.xlane.xlu1 %194 }
  0xa1   : > { %v189_v33 = vpop.xlane.xlu0 %188  ;;  %v213_v41 = vmul.f32 0.00390625, %v195_v32 }
  0xa2   : > { %v211_v42 = vmul.f32 0.00390625, %v189_v33  ;;  %v258_v33 = vld [vmem:[%s743_s1 + $0x38] sm:$0xff] }
  0xa4   : > { %v221_v34 = vpop.xlane.xlu1 %220 }
  0xa5   : > { %v192_v35 = vpop.xlane.xlu0 %191  ;;  %v243_v45 = vadd.f32 %v221_v34, %v211_v42 }
  0xa6   : > { %v212_v38 = vmul.f32 0.00390625, %v192_v35  ;;  %v257_v35 = vld [vmem:[%s743_s1 + $0x30] sm:$0xff] }
  0xa7   : > { %v267_v55 = vmul.f32 %v251_v49, %v243_v45 }
  0xa8   : > { %v198_v36 = vpop.xlane.xlu1 %197 }
  0xa9   : > { %v224_v37 = vpop.xlane.xlu0 %223  ;;  %v214_v46 = vmul.f32 0.00390625, %v198_v36  ;;  %v276_v3 = vsel %vm275_vm0, %v267_v55, 0.0 }
  0xaa   : > { %v244_v43 = vadd.f32 %v224_v37, %v212_v38 }
  0xac   : > { %v201_v39 = vpop.xlane.xlu1 %200  ;;  %v268_v52 = vmul.f32 %v252_v44, %v244_v43 }
  0xad   : > { %v227_v40 = vpop.xlane.xlu0 %226  ;;  %v215_v56 = vmul.f32 0.00390625, %v201_v39 }
  0xae   : > { %v245_v47 = vadd.f32 %v227_v40, %v213_v41  ;;  %v277_v61 = vsel %vm275_vm0, %v268_v52, 0.0 }
  0xaf   : > { %v278_v13 = vadd.f32 %v277_v61, %v276_v3  ;;  %v264_v3 = vld [vmem:[%s744_s2 + $0x28] sm:$0xff] }
  0xb0   : > { %v204_v48 = vpop.xlane.xlu1 %203  ;;  %v269_v57 = vmul.f32 %v253_v50, %v245_v47 }
  0xb1   : > { %v230_v51 = vpop.xlane.xlu0 %229  ;;  %v216_v8 = vmul.f32 0.00390625, %v204_v48 }
  0xb2   : > { %v246_v53 = vadd.f32 %v230_v51, %v214_v46  ;;  %v279_v7 = vsel %vm275_vm0, %v269_v57, 0.0  ;;  %v261_v57 = vld [vmem:[%s744_s2 + $0x10] sm:$0xff] }
  0xb3   : > { %v280_v25 = vadd.f32 %v279_v7, %v278_v13  ;;  %v263_v7 = vld [vmem:[%s744_s2 + $0x20] sm:$0xff] }
  0xb4   : > { %v207_v58 = vpop.xlane.xlu1 %206  ;;  %v270_v62 = vmul.f32 %v254_v54, %v246_v53  ;;  %v260_v53 = vld [vmem:[%s744_s2 + $0x8] sm:$0xff]  ;;  %v259_v54 = vld [vmem:[%s744_s2] sm:$0xff] }
  0xb5   : > { %v233_v60 = vpop.xlane.xlu0 %232  ;;  %v217_v28 = vmul.f32 0.00390625, %v207_v58 }
  0xb6   : > { %v247_v63 = vadd.f32 %v233_v60, %v215_v56  ;;  %v281_v21 = vsel %vm275_vm0, %v270_v62, 0.0  ;;  %v262_v56 = vld [vmem:[%s744_s2 + $0x18] sm:$0xff] }
  0xb7   : > { %v282_v32 = vadd.f32 %v281_v21, %v280_v25 }
  0xb8   : > { %v271_v9 = vmul.f32 %v255_v59, %v247_v63  ;;  %v210_v12 = vpop.xlane.xlu1 %209 }
  0xb9   : > { %v218_v16 = vmul.f32 0.00390625, %v210_v12  ;;  %v236_v20 = vpop.xlane.xlu0 %235 }
  0xba   : > { %v248_v24 = vadd.f32 %v236_v20, %v216_v8  ;;  %v283_v29 = vsel %vm275_vm0, %v271_v9, 0.0 }
  0xbb   : > { %v284_v39 = vadd.f32 %v283_v29, %v282_v32 }
  0xbc   : > { %v272_v30 = vmul.f32 %v256_v17, %v248_v24  ;;  %v242_v31 = vpop.xlane.xlu1 %241  ;;  %v265_v17 = vld [vmem:[%s744_s2 + $0x30] sm:$0xff] }
  0xbd   : > { %v250_v34 = vadd.f32 %v242_v31, %v218_v16  ;;  %v239_v36 = vpop.xlane.xlu0 %238  ;;  %v266_v16 = vld [vmem:[%s744_s2 + $0x38] sm:$0xff] }
  0xbe   : > { %v285_v37 = vsel %vm275_vm0, %v272_v30, 0.0  ;;  %v249_v38 = vadd.f32 %v239_v36, %v217_v28 }
  0xbf   : > { %v274_v40 = vmul.f32 %v258_v33, %v250_v34  ;;  %v286_v42 = vadd.f32 %v285_v37, %v284_v39 }
  0xc0   : > { %v273_v41 = vmul.f32 %v257_v35, %v249_v38 }
  0xc1   : > { %v289_v45 = vsel %vm275_vm0, %v274_v40, 0.0 }
  0xc2   : > { %v287_v43 = vsel %vm275_vm0, %v273_v41, 0.0 }
  0xc3   : > { %v288_v44 = vadd.f32 %v287_v43, %v286_v42 }
  0xc5   : > { %v290_v46 = vadd.f32 %v289_v45, %v288_v44 }
  0xc7   : > { %v291_v47 = vrot.slane %v290_v46, 4 }
  0xc9   : > { %v292_v48 = vadd.f32 %v291_v47, %v290_v46 }
  0xcb   : > { %v293_v49 = vrot.slane %v292_v48, 2 }
  0xcd   : > { %v294_v50 = vadd.f32 %v293_v49, %v292_v48 }
  0xcf   : > { %v295_v51 = vrot.slane %v294_v50, 1 }
  0xd1   : > { %v296_v52 = vadd.f32 %v295_v51, %v294_v50 }
  0xd3   : > { %v297_v55 = vmax.f32 %v296_v52, 0.0 }
  0xd5   : > { %v299_v58 = vmul.f32 %v297_v55, %v260_v53  ;;  %v298_v59 = vmul.f32 %v297_v55, %v259_v54  ;;  %v301_v62 = vmul.f32 %v297_v55, %v262_v56  ;;  %v300_v63 = vmul.f32 %v297_v55, %v261_v57 }
  0xd6   : > { %v303_v12 = vmul.f32 %v297_v55, %v264_v3  ;;  %v302_v13 = vmul.f32 %v297_v55, %v263_v7  ;;  %v305_v24 = vmul.f32 %v297_v55, %v266_v16  ;;  %v304_v25 = vmul.f32 %v297_v55, %v265_v17 }
  0xd7   : > { %v309_v60 = vsel %vm275_vm0, %v299_v58, 0.0  ;;  %v306_v61 = vsel %vm275_vm0, %v298_v59, 0.0  ;;  %v315_v8 = vsel %vm275_vm0, %v301_v62, 0.0  ;;  %v312_v9 = vsel %vm275_vm0, %v300_v63, 0.0 }
  0xd8   : > { %310 = vadd.xlane.f32.xlu1 %v309_v60  ;;  %307 = vadd.xlane.f32.xlu0 %v306_v61  ;;  %v321_v20 = vsel %vm275_vm0, %v303_v12, 0.0  ;;  %v318_v21 = vsel %vm275_vm0, %v302_v13, 0.0  ;;  %v327_v28 = vsel %vm275_vm0, %v305_v24, 0.0  ;;  %v324_v29 = vsel %vm275_vm0, %v304_v25, 0.0 }
  0xdc   : > { %316 = vadd.xlane.f32.xlu1 %v315_v8  ;;  %313 = vadd.xlane.f32.xlu0 %v312_v9 }
  0xe0   : > { %322 = vadd.xlane.f32.xlu1 %v321_v20  ;;  %319 = vadd.xlane.f32.xlu0 %v318_v21 }
  0xe4   : > { %328 = vadd.xlane.f32.xlu1 %v327_v28  ;;  %325 = vadd.xlane.f32.xlu0 %v324_v29 }
 0x165   : > { %v311_v30 = vpop.xlane.xlu1 %310  ;;  %v308_v31 = vpop.xlane.xlu0 %307 }
 0x166   : > { %v331_v32 = vsub.f32 0.0, %v311_v30  ;;  %v330_v33 = vsub.f32 0.0, %v308_v31 }
 0x168   : > { %v340_v34 = vmul.f32 1.442695, %v331_v32  ;;  %v338_v35 = vmul.f32 1.442695, %v330_v33 }
 0x169   : > { %v317_v36 = vpop.xlane.xlu1 %316  ;;  %v314_v37 = vpop.xlane.xlu0 %313 }
 0x16a   : > { %478 = vpow2.f32 %v340_v34  ;;  %v333_v38 = vsub.f32 0.0, %v317_v36  ;;  %v332_v39 = vsub.f32 0.0, %v314_v37 }
 0x16b   : > { %480 = vpow2.f32 %v338_v35 }
 0x16c   : > { %v344_v40 = vmul.f32 1.442695, %v333_v38  ;;  %v342_v41 = vmul.f32 1.442695, %v332_v39 }
 0x16d   : > { %v323_v42 = vpop.xlane.xlu1 %322  ;;  %v320_v43 = vpop.xlane.xlu0 %319 }
 0x16e   : > { %482 = vpow2.f32 %v344_v40  ;;  %v335_v44 = vsub.f32 0.0, %v323_v42  ;;  %v334_v45 = vsub.f32 0.0, %v320_v43 }
 0x16f   : > { %484 = vpow2.f32 %v342_v41 }
 0x170   : > { %v348_v46 = vmul.f32 1.442695, %v335_v44  ;;  %v346_v47 = vmul.f32 1.442695, %v334_v45 }
 0x171   : > { %v329_v48 = vpop.xlane.xlu1 %328  ;;  %v326_v49 = vpop.xlane.xlu0 %325 }
 0x172   : > { %486 = vpow2.f32 %v348_v46  ;;  %v337_v50 = vsub.f32 0.0, %v329_v48  ;;  %v336_v51 = vsub.f32 0.0, %v326_v49 }
 0x173   : > { %488 = vpow2.f32 %v346_v47 }
 0x174   : > { %v479_v52 = vpop.eup %478  ;;  %v352_v53 = vmul.f32 1.442695, %v337_v50  ;;  %v350_v56 = vmul.f32 1.442695, %v336_v51 }
 0x175   : > { %v481_v54 = vpop.eup %480  ;;  %v355_v55 = vadd.f32 1.0, %v479_v52 }
 0x176   : > { %v354_v57 = vadd.f32 1.0, %v481_v54  ;;  %490 = vpow2.f32 %v352_v53 }
 0x177   : > { %492 = vrcp.f32 %v355_v55 }
 0x178   : > { %v483_v58 = vpop.eup %482  ;;  %494 = vrcp.f32 %v354_v57 }
 0x179   : > { %v485_v59 = vpop.eup %484  ;;  %v357_v60 = vadd.f32 1.0, %v483_v58  ;;  %496 = vpow2.f32 %v350_v56 }
 0x17a   : > { %v356_v61 = vadd.f32 1.0, %v485_v59 }
 0x17b   : > { %498 = vrcp.f32 %v357_v60 }
 0x17c   : > { %v487_v62 = vpop.eup %486  ;;  %500 = vrcp.f32 %v356_v61 }
 0x17d   : > { %v489_v63 = vpop.eup %488  ;;  %v359_v3 = vadd.f32 1.0, %v487_v62 }
 0x17e   : > { %v358_v7 = vadd.f32 1.0, %v489_v63 }
 0x17f   : > { %502 = vrcp.f32 %v359_v3 }
 0x180   : > { %v491_v8 = vpop.eup %490  ;;  %504 = vrcp.f32 %v358_v7 }
 0x181   : > { %v493_v9 = vpop.eup %492  ;;  %v361_v12 = vadd.f32 1.0, %v491_v8 }
 0x182   : > { %v495_v13 = vpop.eup %494  ;;  %v372_v16 = vmul.f32 %v493_v9, %v571_v5  ;;  %v373_v17 = vmul.f32 %v493_v9, %v574_v6 }
 0x183   : > { %v497_v20 = vpop.eup %496  ;;  %v370_v21 = vmul.f32 %v495_v13, %v563_v2  ;;  %v371_v24 = vmul.f32 %v495_v13, %v568_v4  ;;  %506 = vrcp.f32 %v361_v12 }
 0x184   : > { %388 = vst [vmem:[%s705_s28 + $0x10] sm:$0xff] %v372_v16  ;;  %389 = vst [vmem:[%s705_s28 + $0x18] sm:$0xff] %v373_v17  ;;  %v360_v25 = vadd.f32 1.0, %v497_v20 }
 0x185   : > { %v499_v28 = vpop.eup %498  ;;  %386 = vst [vmem:[%s705_s28] sm:$0xff] %v370_v21  ;;  %387 = vst [vmem:[%s705_s28 + $0x8] sm:$0xff] %v371_v24 }
 0x186   : > { %v501_v29 = vpop.eup %500  ;;  %v376_v5 = vmul.f32 %v499_v28, %v583_v10  ;;  %v377_v6 = vmul.f32 %v499_v28, %v586_v11  ;;  %508 = vrcp.f32 %v360_v25 }
 0x187   : > { %v374_v2 = vmul.f32 %v501_v29, %v557_v0  ;;  %v375_v4 = vmul.f32 %v501_v29, %v560_v1 }
 0x188   : > { %392 = vst [vmem:[%s705_s28 + $0x30] sm:$0xff] %v376_v5  ;;  %393 = vst [vmem:[%s705_s28 + $0x38] sm:$0xff] %v377_v6 }
 0x189   : > { %v503_v30 = vpop.eup %502  ;;  %390 = vst [vmem:[%s705_s28 + $0x20] sm:$0xff] %v374_v2  ;;  %391 = vst [vmem:[%s705_s28 + $0x28] sm:$0xff] %v375_v4 }
 0x18a   : > { %v505_v31 = vpop.eup %504  ;;  %v380_v10 = vmul.f32 %v503_v30, %v603_v18  ;;  %v381_v11 = vmul.f32 %v503_v30, %v606_v19 }
 0x18b   : > { %v378_v32 = vmul.f32 %v505_v31, %v593_v14  ;;  %v379_v0 = vmul.f32 %v505_v31, %v596_v15 }
 0x18c   : > { %396 = vst [vmem:[%s705_s28 + $0x50] sm:$0xff] %v380_v10  ;;  %397 = vst [vmem:[%s705_s28 + $0x58] sm:$0xff] %v381_v11 }
 0x18d   : > { %v507_v1 = vpop.eup %506  ;;  %394 = vst [vmem:[%s705_s28 + $0x40] sm:$0xff] %v378_v32  ;;  %395 = vst [vmem:[%s705_s28 + $0x48] sm:$0xff] %v379_v0 }
 0x18e   : > { %v384_v33 = vmul.f32 %v507_v1, %v623_v26  ;;  %v385_v34 = vmul.f32 %v507_v1, %v626_v27 }
 0x190   : > { %v509_v35 = vpop.eup %508  ;;  %400 = vst [vmem:[%s705_s28 + $0x70] sm:$0xff] %v384_v33  ;;  %401 = vst [vmem:[%s705_s28 + $0x78] sm:$0xff] %v385_v34 }
 0x191   : > { %v382_v18 = vmul.f32 %v509_v35, %v613_v22  ;;  %v383_v19 = vmul.f32 %v509_v35, %v616_v23 }
 0x193   : > { %398 = vst [vmem:[%s705_s28 + $0x60] sm:$0xff] %v382_v18  ;;  %399 = vst [vmem:[%s705_s28 + $0x68] sm:$0xff] %v383_v19 }
 0x194 PF: > { %s13_s12 = sadd.s32 1, %s516_s12  }
 0x195   : > { %p10_p4 = scmp.ge.s32.totalorder %s13_s12, 4  }
 0x197   :  { %12 = sbr.rel (!%p10_p4) target bundleno = 1 (0x1), region = 62 }

</bundles_post_ra>
